<compile_context>
chip_gen: v7x
topology: tpu7x:2x2x1
jax: 0.10.0
libtpu: 0.0.40
codegen_flags: <defaults>
</compile_context>

<pallas_src>
import functools

import jax
import jax.numpy as jnp
from jax import lax
from jax.experimental import pallas as pl
from jax.experimental.pallas import tpu as pltpu


# ------------------------------ geometry helpers -------------------------------

def _geom(h, w):
    """Stored-layout geometry for a feature map of logical spatial (h, w)."""
    hp, wp = h + 2, w + 2               # halo-padded dims (pad=1 baked into the layout)
    l = hp * wp                         # flattened padded image length
    p = wp + 1                          # front/back guard lanes
    return dict(h=h, w=w, hp=hp, wp=wp, l=l, p=p, ls=l + 2 * p)


def _interior_mask(g):
    m = jnp.zeros((g["hp"], g["wp"]), jnp.float32)
    m = m.at[1:1 + g["h"], 1:1 + g["w"]].set(1.0)
    return m.reshape(1, g["l"])


# -------------------------------- Pallas kernel ---------------------------------

def _conv_bn_body(x_ref, w_ref, b_ref, m_ref, r_ref, o_ref, *,
                  nb, l_out, p_out, taps, relu):
    """Fused conv (one K-folded MXU matmul per image) + BN bias (+residual) (+ReLU).

    x_ref : (Nb, NPH, Cin, Ls_in)  bf16  phase-view stored activations
    w_ref : (Cout, T*Cin)          bf16  BN scale folded in, tap-major rows
    b_ref : (Cout, 1)              f32   BN bias
    m_ref : (1, L_out)             f32   interior (non-halo) mask
    r_ref : (Nb, Cout, Ls_out)     bf16  residual in the output layout (or None)
    o_ref : (Nb, Cout, Ls_out)     bf16  output, written in the next conv's input layout
    """
    cout = w_ref.shape[0]
    w = w_ref[...]
    bias = b_ref[...]
    mask = m_ref[...]
    zpad = jnp.zeros((cout, p_out), jnp.bfloat16)
    used = sorted({p for p, _ in taps})
    for b in range(nb):
        ph = {p: x_ref[b, p] for p in used}                # (Cin, Ls_in) each
        cols = [ph[p][:, q:q + l_out] for p, q in taps]    # contiguous lane-offset slices
        xcol = cols[0] if len(cols) == 1 else jnp.concatenate(cols, axis=0)
        y = jnp.dot(w, xcol, preferred_element_type=jnp.float32) + bias
        if r_ref is not None:
            y = y + r_ref[b, :, p_out:p_out + l_out].astype(jnp.float32)
        if relu:
            y = jnp.maximum(y, 0.0)
        y = (y * mask).astype(jnp.bfloat16)                # zero halo for the next conv
        o_ref[b, :, :p_out] = zpad
        o_ref[b, :, p_out:p_out + l_out] = y
        o_ref[b, :, p_out + l_out:] = zpad


def _conv_bn_kernel(x_ref, w_ref, b_ref, m_ref, o_ref, **cfg):
    _conv_bn_body(x_ref, w_ref, b_ref, m_ref, None, o_ref, **cfg)


def _conv_bn_res_kernel(x_ref, w_ref, b_ref, m_ref, r_ref, o_ref, **cfg):
    _conv_bn_body(x_ref, w_ref, b_ref, m_ref, r_ref, o_ref, **cfg)


# --------------------------------- kernel driver --------------------------------

def _conv_call(x_ph, w2, bias, mask, taps, g_out, relu, residual=None, nb=1):
    """One fused conv+BN(+residual)(+ReLU) pallas_call; grid over batch groups."""
    n, nph, cin, ls_in = x_ph.shape
    assert n % nb == 0
    cout = w2.shape[0]
    l_out, p_out, ls_out = g_out["l"], g_out["p"], g_out["ls"]

    cfg = dict(nb=nb, l_out=l_out, p_out=p_out, taps=tuple(taps), relu=relu)
    in_specs = [
        pl.BlockSpec((nb, nph, cin, ls_in), lambda i: (i, 0, 0, 0)),
        pl.BlockSpec(w2.shape, lambda i: (0, 0)),
        pl.BlockSpec(bias.shape, lambda i: (0, 0)),
        pl.BlockSpec(mask.shape, lambda i: (0, 0)),
    ]
    args = [x_ph, w2, bias, mask]
    if residual is not None:
        in_specs.append(pl.BlockSpec((nb, cout, ls_out), lambda i: (i, 0, 0)))
        args.append(residual)
        kernel = functools.partial(_conv_bn_res_kernel, **cfg)
    else:
        kernel = functools.partial(_conv_bn_kernel, **cfg)

    # Exact per-step budget: double-buffered in/out blocks + in-kernel temporaries
    # (im2col operand, f32 accumulator, phase loads); capped so it fits every generation.
    bytes_in = nb * nph * cin * ls_in * 2 + w2.size * 2 + bias.size * 4 + mask.size * 4
    bytes_out = nb * cout * ls_out * 2
    if residual is not None:
        bytes_in += nb * cout * ls_out * 2
    bytes_tmp = w2.shape[1] * l_out * 2 + 3 * cout * l_out * 4 + nph * cin * ls_in * 2
    vmem = int(min(48 << 20, max(8 << 20,
                                 2 * (bytes_in + bytes_out) + bytes_tmp + (4 << 20))))

    return pl.pallas_call(
        kernel,
        out_shape=jax.ShapeDtypeStruct((n, cout, ls_out), jnp.bfloat16),
        grid=(n // nb,),
        in_specs=in_specs,
        out_specs=pl.BlockSpec((nb, cout, ls_out), lambda i: (i, 0, 0)),
        compiler_params=pltpu.CompilerParams(
            dimension_semantics=("parallel",),
            vmem_limit_bytes=vmem),
    )(*args)


# ------------------------------ layout conversions ------------------------------

def to_stored(x_nchw, g):
    """NCHW -> bf16 stored layout (N, C, Ls): flattened halo-padded image + guard lanes."""
    xb = jnp.pad(x_nchw.astype(jnp.bfloat16), ((0, 0), (0, 0), (1, 1), (1, 1)))
    n, c = xb.shape[0], xb.shape[1]
    return jnp.pad(xb.reshape(n, c, g["l"]), ((0, 0), (0, 0), (g["p"], g["p"])))


def from_stored(x_st, g):
    n, c = x_st.shape[0], x_st.shape[1]
    xf = x_st[:, :, g["p"]:g["p"] + g["l"]].reshape(n, c, g["hp"], g["wp"])
    return xf[:, :, 1:1 + g["h"], 1:1 + g["w"]].astype(jnp.float32)


def to_phases(x_st, g_in, g_out):
    """Stride-2 phase views of a stored activation, each in the output's stored geometry.
    TODO(synk): emit this layout directly from the previous conv's epilogue instead."""
    n, c = x_st.shape[0], x_st.shape[1]
    xp = x_st[:, :, g_in["p"]:g_in["p"] + g_in["l"]].reshape(n, c, g_in["hp"], g_in["wp"])
    phases = []
    for a in (0, 1):
        for b in (0, 1):
            ph = xp[:, :, a::2, b::2][:, :, :g_out["hp"], :g_out["wp"]]
            ph = jnp.pad(ph, ((0, 0), (0, 0),
                              (0, g_out["hp"] - ph.shape[2]),
                              (0, g_out["wp"] - ph.shape[3])))
            ph = jnp.pad(ph.reshape(n, c, g_out["l"]),
                         ((0, 0), (0, 0), (g_out["p"], g_out["p"])))
            phases.append(ph)
    return jnp.stack(phases, axis=1)                       # (N, 4, C, Ls_out)


# ------------------------------- parameter handling ------------------------------

def make_basic_block(key, inplanes, planes, stride=1):
    """Raw PyTorch-layout parameters (OIHW conv weights, BN running stats)."""
    def conv_w(k, cout, cin, kh, kw):
        fan_out = cout * kh * kw            # kaiming_normal_, mode='fan_out', relu
        return jax.random.normal(k, (cout, cin, kh, kw), jnp.float32) * (2.0 / fan_out) ** 0.5

    def bn_p(k, c):
        k1, k2, k3, k4 = jax.random.split(k, 4)
        return dict(gamma=1.0 + 0.2 * jax.random.normal(k1, (c,), jnp.float32),
                    beta=0.1 * jax.random.normal(k2, (c,), jnp.float32),
                    mean=0.1 * jax.random.normal(k3, (c,), jnp.float32),
                    var=0.5 + jax.random.uniform(k4, (c,), jnp.float32))

    ks = jax.random.split(key, 6)
    raw = dict(stride=stride,
               conv1_w=conv_w(ks[0], planes, inplanes, 3, 3), bn1=bn_p(ks[1], planes),
               conv2_w=conv_w(ks[2], planes, planes, 3, 3), bn2=bn_p(ks[3], planes))
    if stride != 1 or inplanes != planes:
        raw["downsample_w"] = conv_w(ks[4], planes, inplanes, 1, 1)
        raw["bn_ds"] = bn_p(ks[5], planes)
    return raw


def _fold_bn(w_oihw, bn, eps=1e-5):
    """OIHW + BN -> ((Cout, KhKwCin) bf16 scale-folded weights, (Cout, 1) f32 bias)."""
    cout, cin, kh, kw = w_oihw.shape
    scale = bn["gamma"] / jnp.sqrt(bn["var"] + eps)
    bias = (bn["beta"] - bn["mean"] * scale).astype(jnp.float32)[:, None]
    w2 = (jnp.transpose(w_oihw * scale[:, None, None, None], (0, 2, 3, 1))
          .reshape(cout, kh * kw * cin).astype(jnp.bfloat16))
    return w2, bias


def prepare_block(raw):
    blk = dict(stride=raw["stride"],
               inplanes=raw["conv1_w"].shape[1], planes=raw["conv1_w"].shape[0])
    blk["conv1_w"], blk["conv1_b"] = _fold_bn(raw["conv1_w"], raw["bn1"])
    blk["conv2_w"], blk["conv2_b"] = _fold_bn(raw["conv2_w"], raw["bn2"])
    if "downsample_w" in raw:
        blk["ds_w"], blk["ds_b"] = _fold_bn(raw["downsample_w"], raw["bn_ds"])
    return blk


# ---------------------------------- forward pass ---------------------------------

def basic_block_forward_stored(blk, x_st, g_in, nb):
    """BasicBlock.forward on the bf16 stored layout; returns (out_stored, g_out)."""
    s = blk["stride"]
    assert s in (1, 2)
    if s == 1:
        g_out = g_in
        x_in = x_st[:, None]                                   # (N, 1, Cin, Ls)
        taps1 = [(0, di * g_in["wp"] + dj) for di in range(3) for dj in range(3)]
    else:
        assert g_in["h"] % 2 == 0 and g_in["w"] % 2 == 0
        g_out = _geom(g_in["h"] // 2, g_in["w"] // 2)
        x_in = to_phases(x_st, g_in, g_out)                    # (N, 4, Cin, Ls_out)
        taps1 = [((di % 2) * 2 + (dj % 2), (di // 2) * g_out["wp"] + (dj // 2))
                 for di in range(3) for dj in range(3)]
    mask = _interior_mask(g_out)

    h = _conv_call(x_in, blk["conv1_w"], blk["conv1_b"], mask, taps1,
                   g_out, relu=True, nb=nb)                    # conv1 + bn1 + relu

    if "ds_w" in blk:
        taps_ds = [(3, 0)] if s == 2 else [(0, g_in["p"])]
        identity = _conv_call(x_in, blk["ds_w"], blk["ds_b"], mask, taps_ds,
                              g_out, relu=False, nb=nb)        # 1x1 downsample + bn
    else:
        identity = x_st

    taps2 = [(0, di * g_out["wp"] + dj) for di in range(3) for dj in range(3)]
    out = _conv_call(h[:, None], blk["conv2_w"], blk["conv2_b"], mask, taps2,
                     g_out, relu=True, residual=identity, nb=nb)  # conv2+bn2+add+relu
    return out, g_out


# ------------------------------- pure-JAX reference ------------------------------

def _ref_conv(x, w, stride, pad):
    return lax.conv_general_dilated(
        x, w, (stride, stride), ((pad, pad), (pad, pad)),
        dimension_numbers=("NCHW", "OIHW", "NCHW"),
        precision=lax.Precision.HIGHEST)


def basic_block_ref(raw, x_nchw, eps=1e-5):
    """Mirrors the kernel numerics: BN scale folded into bf16 weights, bf16 activation
    storage between layers, f32 accumulation."""
    def fold(w, bn):
        scale = bn["gamma"] / jnp.sqrt(bn["var"] + eps)
        w_eff = (w * scale[:, None, None, None]).astype(jnp.bfloat16).astype(jnp.float32)
        return w_eff, (bn["beta"] - bn["mean"] * scale)[None, :, None, None]

    def q(v):  # bf16 storage rounding
        return v.astype(jnp.bfloat16).astype(jnp.float32)

    x = q(x_nchw.astype(jnp.float32))
    s = raw["stride"]
    w1, b1 = fold(raw["conv1_w"], raw["bn1"])
    h = q(jnp.maximum(_ref_conv(x, w1, s, 1) + b1, 0.0))
    if "downsample_w" in raw:
        wd, bd = fold(raw["downsample_w"], raw["bn_ds"])
        identity = q(_ref_conv(x, wd, s, 0) + bd)
    else:
        identity = x
    w2, b2 = fold(raw["conv2_w"], raw["bn2"])
    return q(jnp.maximum(_ref_conv(h, w2, 1, 1) + b2 + identity, 0.0))


# --------------------------------------- main -------------------------------------

def _pick_nb(n):
    for cand in (4, 2, 1):
        if n % cand == 0 and n // cand >= 4:   # >=4 grid steps -> >=2 per v7x TensorCore
            return cand
    return 1


if __name__ == "__main__":
    key = jax.random.PRNGKey(0)
    kx, ka, kb = jax.random.split(key, 3)

    N, C, H, W = 8, 16, 16, 16
    x = jax.random.normal(kx, (N, C, H, W), jnp.float32)

    # Block A: stride=1 identity shortcut.  Block B: stride=2 with 1x1 downsample.
    raw_a = make_basic_block(ka, inplanes=16, planes=16, stride=1)
    raw_b = make_basic_block(kb, inplanes=16, planes=32, stride=2)
    blk_a, blk_b = prepare_block(raw_a), prepare_block(raw_b)

    nb = _pick_nb(N)
    g0 = _geom(H, W)
    x_st = to_stored(x, g0)
    a_st, g1 = basic_block_forward_stored(blk_a, x_st, g0, nb)   # stays in stored layout
    b_st, g2 = basic_block_forward_stored(blk_b, a_st, g1, nb)   # chained, no relayout
    out_a = from_stored(a_st, g1)
    out_b = jax.block_until_ready(from_stored(b_st, g2))

    assert out_a.shape == (N, 16, H, W), out_a.shape
    assert out_b.shape == (N, 32, H // 2, W // 2), out_b.shape
    assert bool(jnp.all(jnp.isfinite(out_a))) and bool(jnp.all(jnp.isfinite(out_b)))

    def _close(a, b, rtol=1e-2, atol=5e-3):
        return bool(jnp.all(jnp.abs(a - b) <= atol + rtol * jnp.abs(b)))

    assert _close(out_a, basic_block_ref(raw_a, x)), "block A mismatch"
    assert _close(out_b, basic_block_ref(raw_b, out_a)), "block B mismatch"

    print("KERNEL_OK")
</pallas_src>

<mosaic_0001>
module attributes {stable_mosaic.version = 11 : i64} {
  func.func @_conv_bn_kernel(%arg0: i32, %arg1: memref<2x1x16x362xbf16, #tpu.memory_space<vmem>>, %arg2: memref<16x144xbf16, #tpu.memory_space<vmem>>, %arg3: memref<16x1xf32, #tpu.memory_space<vmem>>, %arg4: memref<1x324xf32, #tpu.memory_space<vmem>>, %arg5: memref<2x16x362xbf16, #tpu.memory_space<vmem>>) attributes {dimension_semantics = [#tpu.dimension_semantics<parallel>], iteration_bounds = array<i64: 4>, scalar_prefetch = 0 : i64, scratch_operands = 0 : i64, tpu.core_type = #tpu.core_type<tc>, window_params = [{transform_indices = @transform_0, window_bounds = array<i64: 2, 1, 16, 362>}, {pipeline_mode = #tpu.pipeline_mode<synchronous>, transform_indices = @transform_1, window_bounds = array<i64: 16, 144>}, {pipeline_mode = #tpu.pipeline_mode<synchronous>, transform_indices = @transform_2, window_bounds = array<i64: 16, 1>}, {pipeline_mode = #tpu.pipeline_mode<synchronous>, transform_indices = @transform_3, window_bounds = array<i64: 1, 324>}, {transform_indices = @transform_4, window_bounds = array<i64: 2, 16, 362>}]} {
    %c0 = arith.constant 0 : index
    %c0_0 = arith.constant 0 : index
    %0 = vector.load %arg2[%c0, %c0_0] : memref<16x144xbf16, #tpu.memory_space<vmem>>, vector<16x144xbf16>
    %c0_1 = arith.constant 0 : index
    %c0_2 = arith.constant 0 : index
    %1 = vector.load %arg3[%c0_1, %c0_2] : memref<16x1xf32, #tpu.memory_space<vmem>>, vector<16x1xf32>
    %c0_3 = arith.constant 0 : index
    %c0_4 = arith.constant 0 : index
    %2 = vector.load %arg4[%c0_3, %c0_4] : memref<1x324xf32, #tpu.memory_space<vmem>>, vector<1x324xf32>
    %cst = arith.constant 0.000000e+00 : bf16
    %3 = vector.broadcast %cst : bf16 to vector<16x19xbf16>
    %c0_5 = arith.constant 0 : index
    %c0_6 = arith.constant 0 : index
    %c0_7 = arith.constant 0 : index
    %c0_8 = arith.constant 0 : index
    %4 = vector.load %arg1[%c0_5, %c0_6, %c0_7, %c0_8] : memref<2x1x16x362xbf16, #tpu.memory_space<vmem>>, vector<1x1x16x362xbf16>
    %5 = vector.shape_cast %4 : vector<1x1x16x362xbf16> to vector<16x362xbf16>
    %6 = vector.extract_strided_slice %5 {offsets = [0, 0], sizes = [16, 324], strides = [1, 1]} : vector<16x362xbf16> to vector<16x324xbf16>
    %7 = vector.extract_strided_slice %5 {offsets = [0, 1], sizes = [16, 324], strides = [1, 1]} : vector<16x362xbf16> to vector<16x324xbf16>
    %8 = vector.extract_strided_slice %5 {offsets = [0, 2], sizes = [16, 324], strides = [1, 1]} : vector<16x362xbf16> to vector<16x324xbf16>
    %9 = vector.extract_strided_slice %5 {offsets = [0, 18], sizes = [16, 324], strides = [1, 1]} : vector<16x362xbf16> to vector<16x324xbf16>
    %10 = vector.extract_strided_slice %5 {offsets = [0, 19], sizes = [16, 324], strides = [1, 1]} : vector<16x362xbf16> to vector<16x324xbf16>
    %11 = vector.extract_strided_slice %5 {offsets = [0, 20], sizes = [16, 324], strides = [1, 1]} : vector<16x362xbf16> to vector<16x324xbf16>
    %12 = vector.extract_strided_slice %5 {offsets = [0, 36], sizes = [16, 324], strides = [1, 1]} : vector<16x362xbf16> to vector<16x324xbf16>
    %13 = vector.extract_strided_slice %5 {offsets = [0, 37], sizes = [16, 324], strides = [1, 1]} : vector<16x362xbf16> to vector<16x324xbf16>
    %14 = vector.extract_strided_slice %5 {offsets = [0, 38], sizes = [16, 324], strides = [1, 1]} : vector<16x362xbf16> to vector<16x324xbf16>
    %15 = tpu.concatenate %6, %7, %8, %9, %10, %11, %12, %13, %14 in 0 : vector<16x324xbf16>, vector<16x324xbf16>, vector<16x324xbf16>, vector<16x324xbf16>, vector<16x324xbf16>, vector<16x324xbf16>, vector<16x324xbf16>, vector<16x324xbf16>, vector<16x324xbf16> -> vector<144x324xbf16>
    %cst_9 = arith.constant dense<0.000000e+00> : vector<16x324xf32>
    %16 = tpu.matmul %0, %15, %cst_9 {dimension_numbers = #tpu.dot_dimension_numbers<[1], [0], [0], [1], [0, 0, 1, 1], [], []>} : vector<16x144xbf16>, vector<144x324xbf16>, vector<16x324xf32> -> vector<16x324xf32>
    %17 = vector.broadcast %1 : vector<16x1xf32> to vector<16x324xf32>
    %18 = arith.addf %16, %17 : vector<16x324xf32>
    %cst_10 = arith.constant 0.000000e+00 : f32
    %19 = vector.broadcast %cst_10 : f32 to vector<16x324xf32>
    %20 = arith.maximumf %18, %19 : vector<16x324xf32>
    %21 = vector.broadcast %2 : vector<1x324xf32> to vector<16x324xf32>
    %22 = arith.mulf %20, %21 : vector<16x324xf32>
    %23 = arith.truncf %22 : vector<16x324xf32> to vector<16x324xbf16>
    %c0_11 = arith.constant 0 : index
    %c0_12 = arith.constant 0 : index
    %c0_13 = arith.constant 0 : index
    %24 = vector.load %arg5[%c0_11, %c0_12, %c0_13] : memref<2x16x362xbf16, #tpu.memory_space<vmem>>, vector<1x16x19xbf16>
    %25 = vector.shape_cast %24 : vector<1x16x19xbf16> to vector<16x19xbf16>
    %26 = vector.shape_cast %3 : vector<16x19xbf16> to vector<1x16x19xbf16>
    tpu.vector_store %arg5[%c0_11, %c0_12, %c0_13], %26 {strides = array<i32>} : memref<2x16x362xbf16, #tpu.memory_space<vmem>>, vector<1x16x19xbf16>,
    %c0_14 = arith.constant 0 : index
    %c0_15 = arith.constant 0 : index
    %c19 = arith.constant 19 : index
    %27 = vector.load %arg5[%c0_14, %c0_15, %c19] : memref<2x16x362xbf16, #tpu.memory_space<vmem>>, vector<1x16x324xbf16>
    %28 = vector.shape_cast %27 : vector<1x16x324xbf16> to vector<16x324xbf16>
    %29 = vector.shape_cast %23 : vector<16x324xbf16> to vector<1x16x324xbf16>
    tpu.vector_store %arg5[%c0_14, %c0_15, %c19], %29 {strides = array<i32>} : memref<2x16x362xbf16, #tpu.memory_space<vmem>>, vector<1x16x324xbf16>,
    %c0_16 = arith.constant 0 : index
    %c0_17 = arith.constant 0 : index
    %c343 = arith.constant 343 : index
    %30 = vector.load %arg5[%c0_16, %c0_17, %c343] : memref<2x16x362xbf16, #tpu.memory_space<vmem>>, vector<1x16x19xbf16>
    %31 = vector.shape_cast %30 : vector<1x16x19xbf16> to vector<16x19xbf16>
    %32 = vector.shape_cast %3 : vector<16x19xbf16> to vector<1x16x19xbf16>
    tpu.vector_store %arg5[%c0_16, %c0_17, %c343], %32 {strides = array<i32>} : memref<2x16x362xbf16, #tpu.memory_space<vmem>>, vector<1x16x19xbf16>,
    %c1 = arith.constant 1 : index
    %c0_18 = arith.constant 0 : index
    %c0_19 = arith.constant 0 : index
    %c0_20 = arith.constant 0 : index
    %33 = vector.load %arg1[%c1, %c0_18, %c0_19, %c0_20] : memref<2x1x16x362xbf16, #tpu.memory_space<vmem>>, vector<1x1x16x362xbf16>
    %34 = vector.shape_cast %33 : vector<1x1x16x362xbf16> to vector<16x362xbf16>
    %35 = vector.extract_strided_slice %34 {offsets = [0, 0], sizes = [16, 324], strides = [1, 1]} : vector<16x362xbf16> to vector<16x324xbf16>
    %36 = vector.extract_strided_slice %34 {offsets = [0, 1], sizes = [16, 324], strides = [1, 1]} : vector<16x362xbf16> to vector<16x324xbf16>
    %37 = vector.extract_strided_slice %34 {offsets = [0, 2], sizes = [16, 324], strides = [1, 1]} : vector<16x362xbf16> to vector<16x324xbf16>
    %38 = vector.extract_strided_slice %34 {offsets = [0, 18], sizes = [16, 324], strides = [1, 1]} : vector<16x362xbf16> to vector<16x324xbf16>
    %39 = vector.extract_strided_slice %34 {offsets = [0, 19], sizes = [16, 324], strides = [1, 1]} : vector<16x362xbf16> to vector<16x324xbf16>
    %40 = vector.extract_strided_slice %34 {offsets = [0, 20], sizes = [16, 324], strides = [1, 1]} : vector<16x362xbf16> to vector<16x324xbf16>
    %41 = vector.extract_strided_slice %34 {offsets = [0, 36], sizes = [16, 324], strides = [1, 1]} : vector<16x362xbf16> to vector<16x324xbf16>
    %42 = vector.extract_strided_slice %34 {offsets = [0, 37], sizes = [16, 324], strides = [1, 1]} : vector<16x362xbf16> to vector<16x324xbf16>
    %43 = vector.extract_strided_slice %34 {offsets = [0, 38], sizes = [16, 324], strides = [1, 1]} : vector<16x362xbf16> to vector<16x324xbf16>
    %44 = tpu.concatenate %35, %36, %37, %38, %39, %40, %41, %42, %43 in 0 : vector<16x324xbf16>, vector<16x324xbf16>, vector<16x324xbf16>, vector<16x324xbf16>, vector<16x324xbf16>, vector<16x324xbf16>, vector<16x324xbf16>, vector<16x324xbf16>, vector<16x324xbf16> -> vector<144x324xbf16>
    %cst_21 = arith.constant dense<0.000000e+00> : vector<16x324xf32>
    %45 = tpu.matmul %0, %44, %cst_21 {dimension_numbers = #tpu.dot_dimension_numbers<[1], [0], [0], [1], [0, 0, 1, 1], [], []>} : vector<16x144xbf16>, vector<144x324xbf16>, vector<16x324xf32> -> vector<16x324xf32>
    %46 = vector.broadcast %1 : vector<16x1xf32> to vector<16x324xf32>
    %47 = arith.addf %45, %46 : vector<16x324xf32>
    %cst_22 = arith.constant 0.000000e+00 : f32
    %48 = vector.broadcast %cst_22 : f32 to vector<16x324xf32>
    %49 = arith.maximumf %47, %48 : vector<16x324xf32>
    %50 = vector.broadcast %2 : vector<1x324xf32> to vector<16x324xf32>
    %51 = arith.mulf %49, %50 : vector<16x324xf32>
    %52 = arith.truncf %51 : vector<16x324xf32> to vector<16x324xbf16>
    %c1_23 = arith.constant 1 : index
    %c0_24 = arith.constant 0 : index
    %c0_25 = arith.constant 0 : index
    %53 = vector.load %arg5[%c1_23, %c0_24, %c0_25] : memref<2x16x362xbf16, #tpu.memory_space<vmem>>, vector<1x16x19xbf16>
    %54 = vector.shape_cast %53 : vector<1x16x19xbf16> to vector<16x19xbf16>
    %55 = vector.shape_cast %3 : vector<16x19xbf16> to vector<1x16x19xbf16>
    tpu.vector_store %arg5[%c1_23, %c0_24, %c0_25], %55 {strides = array<i32>} : memref<2x16x362xbf16, #tpu.memory_space<vmem>>, vector<1x16x19xbf16>,
    %c1_26 = arith.constant 1 : index
    %c0_27 = arith.constant 0 : index
    %c19_28 = arith.constant 19 : index
    %56 = vector.load %arg5[%c1_26, %c0_27, %c19_28] : memref<2x16x362xbf16, #tpu.memory_space<vmem>>, vector<1x16x324xbf16>
    %57 = vector.shape_cast %56 : vector<1x16x324xbf16> to vector<16x324xbf16>
    %58 = vector.shape_cast %52 : vector<16x324xbf16> to vector<1x16x324xbf16>
    tpu.vector_store %arg5[%c1_26, %c0_27, %c19_28], %58 {strides = array<i32>} : memref<2x16x362xbf16, #tpu.memory_space<vmem>>, vector<1x16x324xbf16>,
    %c1_29 = arith.constant 1 : index
    %c0_30 = arith.constant 0 : index
    %c343_31 = arith.constant 343 : index
    %59 = vector.load %arg5[%c1_29, %c0_30, %c343_31] : memref<2x16x362xbf16, #tpu.memory_space<vmem>>, vector<1x16x19xbf16>
    %60 = vector.shape_cast %59 : vector<1x16x19xbf16> to vector<16x19xbf16>
    %61 = vector.shape_cast %3 : vector<16x19xbf16> to vector<1x16x19xbf16>
    tpu.vector_store %arg5[%c1_29, %c0_30, %c343_31], %61 {strides = array<i32>} : memref<2x16x362xbf16, #tpu.memory_space<vmem>>, vector<1x16x19xbf16>,
    return
  }
  func.func @transform_0(%arg0: i32) -> (i32, i32, i32, i32) {
    %c0_i32 = arith.constant 0 : i32
    %c0_i32_0 = arith.constant 0 : i32
    %c0_i32_1 = arith.constant 0 : i32
    %c0_i32_2 = arith.constant 0 : i32
    return %arg0, %c0_i32, %c0_i32_0, %c0_i32_1 : i32, i32, i32, i32
  }
  func.func @transform_1(%arg0: i32) -> (i32, i32) {
    %c0_i32 = arith.constant 0 : i32
    %c0_i32_0 = arith.constant 0 : i32
    %c0_i32_1 = arith.constant 0 : i32
    return %c0_i32, %c0_i32_0 : i32, i32
  }
  func.func @transform_2(%arg0: i32) -> (i32, i32) {
    %c0_i32 = arith.constant 0 : i32
    %c0_i32_0 = arith.constant 0 : i32
    %c0_i32_1 = arith.constant 0 : i32
    return %c0_i32, %c0_i32_0 : i32, i32
  }
  func.func @transform_3(%arg0: i32) -> (i32, i32) {
    %c0_i32 = arith.constant 0 : i32
    %c0_i32_0 = arith.constant 0 : i32
    %c0_i32_1 = arith.constant 0 : i32
    return %c0_i32, %c0_i32_0 : i32, i32
  }
  func.func @transform_4(%arg0: i32) -> (i32, i32, i32) {
    %c0_i32 = arith.constant 0 : i32
    %c0_i32_0 = arith.constant 0 : i32
    %c0_i32_1 = arith.constant 0 : i32
    return %arg0, %c0_i32, %c0_i32_0 : i32, i32, i32
  }
}

</mosaic_0001>

<bundles_post_ra>
// kernel: tpu_custom_call.1
= control target key start
LH: loop header
LB: loop body
LE: loop exit
PB: predicated region body
PF: predicated region fallthrough
CT: control target
= control target key end

     0   :  { %9 = vsyncpa [#allocation3], 0  ;;  %s1516_s0 = inlined_call_operand.hbm [shape: bf16[8,1,16,362], index: 0, kind: input, shape index: {}]   ;;  %s1517_s1 = inlined_call_operand.vmem [shape: bf16[16,144], index: 1, kind: input, shape index: {}]   ;;  %s1518_s2 = inlined_call_operand.vmem [shape: f32[16,1], index: 2, kind: input, shape index: {}]   ;;  %s1519_s3 = inlined_call_operand.vmem [shape: f32[1,324], index: 3, kind: input, shape index: {}]   ;;  %s1520_s4 = inlined_call_operand.hbm [shape: bf16[8,16,362], index: 4, kind: output, shape index: {}]  }
   0x1   :  { %11 = vsyncpa [#allocation3 + $0x1], 0 }
   0x2   :  { %12 = vsyncpa [#allocation4], 0 }
   0x3   :  { %14 = vsyncpa [#allocation4 + $0x1], 0  ;;  %s1129_s15 = smov 0   ;;  %s1131_s16 = smov 0  }
   0x4   :  { %s1133_s17 = smov 0   ;;  %s1135_s18 = smov 0  }
   0x5 LB: > { %s1150_s19 = sadd.s32 4294967295, %s1086_s18   ;;  %s861_s20 = sadd.s32 4294967294, %s1086_s18   ;;  %s1086_s18 = sphi %s1135_s18, %s1533_s18   ;;  %s1082_s17 = sphi %s1133_s17, %s1532_s17   ;;  %s1078_s16 = sphi %s1131_s16, %s1531_s16   ;;  %s1074_s15 = sphi %s1129_s15, %s1530_s15  }
   0x6   : > { %s1154_s21 = sadd.s32 1, %s1086_s18   ;;  %s27_s22 = sadd.s32 1, %s1082_s17 }
   0x7   : > { %s24_s23 = ssub.s32 %s1086_s18, %s1154_s21  ;;  %p34_p0 = scmp.ne.s32.totalorder %s1082_s17, %s1078_s16 }
   0x8   : > { %p25_p1 = scmp.eq.s32.totalorder %s24_s23, 0  ;;  %p35_p2 = scmp.eq.s32.totalorder %s1086_s18, 0 }
   0x9   : > { %p40_p3 = scmp.ne.s32.totalorder %s1078_s16, %s1074_s15  ;;  %p41_p4 = scmp.eq.s32.totalorder %s1150_s19, 0 }
   0xa   : > { %s1166_s24 = scalar_select %p25_p1, %s1082_s17, %s27_s22  }
   0xb   : > { %p36_p5 = por %p35_p2, %p34_p0  ;;  %p1168_p6 = por %p41_p4, %p40_p3 }
   0xc   : > { %p127_p7 = scmp.eq.s32.totalorder %s1150_s19, 3  ;;  %p133_p8 = scmp.eq.s32.totalorder %s861_s20, 3 }
   0xd   : > { %p929_p9 = scmp.lt.s32.totalorder %s1086_s18, 4  ;;  %s162_s28 = sand.u32 1, %s1082_s17  }
   0xe   : > { %p1174_p10 = por %p127_p7, %p34_p0  ;;  %p1178_p11 = por %p133_p8, %p40_p3 }
   0xf   : > { %s914_s29 = smul.u32 768, %s1086_s18  ;;  %p1189_p12 = pnand %p929_p9, %p36_p5 }
  0x10   : > { %s1523_s26 = scalar_select %p1174_p10, 1, 0 }
  0x11   : > { %s1524_s27 = scalar_select %p1178_p11, 1, 0 }
  0x12   : > { %s913_s30 = smul.u32 48, %s162_s28  ;;  %s1187_s7 = scalar_lea.hbm %s1516_s0, %s914_s29 }
  0x13   : > { %s1195_s11 = scalar_lea.sflag [#allocation3], %s162_s28  ;;  %s990_s12 = scalar_lea.hbm %s1187_s7, 768 }
  0x14   : > { %s166_s9 = scalar_lea.vmem [#allocation2], %s913_s30  ;;  %p991_p13 = scmp.ne.s32.totalorder %s1187_s7, %s990_s12 }
  0x15   : > { %s174_s10 = sshll.u32 %s166_s9, 4  ;;  %p992_p0 = pneg %p1189_p12  ;;  %s1193_s10 = int_to_ptr.vmem [resolvable:$true] %s174_s10 }
  0x16   : > { %s995_s20 = scalar_lea.hbm %s1516_s0, 3072  ;;  %p996_p3 = scmp.lt.u32.totalorder %s1187_s7, %s1516_s0 }
  0x17   : > { %p993_p1 = pnand %p992_p0, %p991_p13  ;;  %p997_p4 = scmp.lt.u32.totalorder %s995_s20, %s990_s12 }
  0x18   : > { %p999_p7 = scmp.lt.u32.totalorder %s990_s12, %s1187_s7 }
  0x19   : > { %p994_p2 = pneg %p993_p1  ;;  %p998_p5 = por %p997_p4, %p996_p3 }
  0x1b   : > { %p1000_p8 = por %p999_p7, %p998_p5 }
  0x1d   : > { %p1001_p9 = pnand %p1000_p8, %p994_p2 }
  0x1f   : > { %1004 = shalt.err (!%p1001_p9)
}
  0x20   : > { %s1005_s28 = scalar_lea.vmem %s1193_s10, 768  ;;  %s1088_s29 = smov [#allocation2]  }
  0x21   : > { %p1006_p13 = scmp.ne.s32.totalorder %s1193_s10, %s1005_s28  ;;  %s1010_s30 = sshll.u32 %s1088_s29, 4  ;;  %s1011_s30 = int_to_ptr.vmem [resolvable:$false] %s1010_s30 }
  0x22   : > { %s1012_s5 = scalar_lea.vmem %s1011_s30, 1536  ;;  %p1013_p10 = scmp.lt.s32.totalorder %s1193_s10, %s1011_s30 }
  0x23   : > { %p1008_p1 = pnand %p1006_p13, %p992_p0  ;;  %p1014_p3 = scmp.lt.s32.totalorder %s1012_s5, %s1005_s28 }
  0x25   : > { %p1009_p11 = pneg %p1008_p1  ;;  %p1015_p4 = por %p1014_p3, %p1013_p10 }
  0x27   : > { %p1016_p5 = pnand %p1015_p4, %p1009_p11 }
  0x29   : > { %1019 = shalt.err (!%p1016_p5)
}
  0x2a   : > { %s1089_s6 = smov 192   ;;  %s1090_s9 = smov 12  }
  0x2b   : > { %924 = dma.hbm_to_vmem [thread:$0]  (!%p1189_p12), %s1187_s7, 768, %s1193_s10, %s1195_s11, %s1089_s6, %s1089_s6, %s1090_s9  }
  0x2c   : > { %p867_p0 = scmp.ge.s32.totalorder %s1086_s18, 1  ;;  %p182_p2 = scmp.lt.s32.totalorder %s1086_s18, 5 }
  0x2e   : > { %p183_p7 = pnand %p867_p0, %p182_p2 }
  0x2f   : > { %s1226_s12 = sand.u32 (!%p183_p7), 1, %s1078_s16  }
  0x30   : > { %186 = sbr.rel (%p183_p7) target bundleno = 631 (0x277), region = 36  ;;  %s189_s14 = scalar_lea.sflag (!%p183_p7), [#allocation3], %s1226_s12 }
  0x31   : > { %s915_s13 = smul.u32 (!%p183_p7), 48, %s1226_s12 }
  0x33   : > { %s1232_s20 = scalar_lea.vmem (!%p183_p7), [#allocation2], %s915_s13 }
  0x37   : > { %1065 = dma.done.wait (%p1168_p6), %s189_s14, 768  }
  0x38   : > { %1067 = vsyncadd (%p1168_p6), %s189_s14, 4294966528  ;;  %v1091_v0 = vmov 0   ;;  %v979_v1 = vld [vmem:[%s1232_s20 + $0x4] ss:$12 sps:$4 sm:$0xff]   ;;  %v981_v2 = vld [vmem:[%s1232_s20] ss:$12 sps:$4 sm:$0xff]  }
  0x39   : > { %407 = vmatprep.subr.bf16.mxu1 %v1091_v0  ;;  %978 = vset.pattern.permute.xlu1 %v1091_v0  ;;  %s1092_s7 = smov 127   ;;  %v982_v3 = vld [vmem:[%s1232_s20 + $0x8] ss:$12 sps:$4 sm:$0xff]   ;;  %s1093_s25 = smov 126   ;;  %vm360_vm0 = vcmask 130048   ;;  %vm251_vm1 = vcmask 1039360  }
  0x3a   : > { %977 = vset.pattern.permute.xlu0 %v1091_v0  ;;  %364 = vmatprep.subr.bf16.mxu0 %v979_v1  ;;  %s1094_s8 = smov 110   ;;  %s1095_s10 = smov 109   ;;  %v1266_v4 = vld [vmem:[%s1517_s1 + $0x4] ss:$8 sps:$4 sm:$0xff]   ;;  %vm263_vm2 = vcmask 1031168   ;;  %vm275_vm3 = vcmask 900096  }
  0x3b   : > { %247 = vrot.lane.b32.xlu0 %v979_v1, %s1092_s7  ;;  %245 = vrot.lane.b32.xlu1 %v981_v2, %s1092_s7  ;;  %s1096_s11 = smov 108   ;;  %s1097_s22 = smov 92   ;;  %v1276_v5 = vld [vmem:[%s1232_s20 + $0x1c] ss:$12 sps:$4 sm:$0xff]   ;;  %v1279_v6 = vld [vmem:[%s1232_s20 + $0x20] ss:$12 sps:$4 sm:$0xff]  }
  0x3c   : > { %365 = vmatpush1.bf16.msra.mxu0 %v981_v2  ;;  %408 = vmatpush1.bf16.msra.mxu1 %v982_v3  ;;  %s1098_s29 = smov 91   ;;  %s1099_s30 = smov 90   ;;  %v1284_v7 = vld [vmem:[%s1232_s20 + $0x18] ss:$12 sps:$4 sm:$0xff]   ;;  %vm287_vm4 = vcmask 891904   ;;  %vm299_vm5 = vcmask 883712  }
  0x3d   : > { %409 = vmatprep.subr.bf16.mxu1 %v1091_v0  ;;  %874 = vmatprep.mubr.msk.bf16.mxu1 %vm360_vm0, %v1266_v4  ;;  %v222_v8 = vld [vmem:[%s1518_s2] sm:$0xff]  ;;  %v223_v9 = vld [vmem:[%s1518_s2 + $0x8] sm:$0xff]  ;;  %vm311_vm6 = vcmask 752640   ;;  %vm323_vm7 = vcmask 744448   ;;  %vm335_vm8 = vcmask 736256   ;;  %vm479_vm9 = vcmask 150528  }
  0x3e   : > { %873 = vmatprep.mubr.msk.bf16.mxu0 %vm360_vm0, %v1266_v4  ;;  %v1359_v47 = vld [vmem:[%s1517_s1] ss:$8 sps:$4 sm:$0xff]   ;;  %vm514_vm10 = vcmask 1043608   ;;  %vm515_vm11 = vcmask 1047556   ;;  %vm505_vm12 = vcmask 154624   ;;  %vm518_vm14 = vcmask 707584  }
  0x3f   : > { %249 = vrot.lane.b32.xlu0 %v982_v3, %s1092_s7  ;;  %259 = vrot.lane.b32.xlu1 %v979_v1, %s1093_s25  ;;  %vm1422_vm13 = vmor %vm515_vm11, %vm514_vm10  ;;  %vm522_vm15 = vcmask 863928   ;;  %p1528_p10 = scmp.ne.s32.totalorder %s1523_s26, 0  ;;  %s1101_s5 = smov [#allocation5]  }
  0x40   : > { %s1024_s6 = sshll.u32 %s1101_s5, 4  ;;  %s1025_s6 = int_to_ptr.vmem [resolvable:$false] %s1024_s6 }
  0x41   : > { %s1026_s9 = scalar_lea.vmem %s1025_s6, 1536 }
  0x43   : > { %261 = vrot.lane.b32.xlu0 %v982_v3, %s1093_s25  ;;  %257 = vrot.lane.b32.xlu1 %v981_v2, %s1093_s25 }
  0x47   : > { %271 = vrot.lane.b32.xlu0 %v979_v1, %s1094_s8  ;;  %273 = vrot.lane.b32.xlu1 %v982_v3, %s1094_s8 }
  0x4b   : > { %269 = vrot.lane.b32.xlu0 %v981_v2, %s1094_s8  ;;  %283 = vrot.lane.b32.xlu1 %v979_v1, %s1095_s10 }
  0x4f   : > { %285 = vrot.lane.b32.xlu0 %v982_v3, %s1095_s10  ;;  %281 = vrot.lane.b32.xlu1 %v981_v2, %s1095_s10 }
  0x53   : > { %295 = vrot.lane.b32.xlu0 %v979_v1, %s1096_s11  ;;  %297 = vrot.lane.b32.xlu1 %v982_v3, %s1096_s11 }
  0x57   : > { %293 = vrot.lane.b32.xlu0 %v981_v2, %s1096_s11  ;;  %307 = vrot.lane.b32.xlu1 %v979_v1, %s1097_s22 }
  0x5b   : > { %309 = vrot.lane.b32.xlu0 %v982_v3, %s1097_s22  ;;  %305 = vrot.lane.b32.xlu1 %v981_v2, %s1097_s22 }
  0x5f   : > { %319 = vrot.lane.b32.xlu0 %v979_v1, %s1098_s29  ;;  %321 = vrot.lane.b32.xlu1 %v982_v3, %s1098_s29 }
  0x63   : > { %317 = vrot.lane.b32.xlu0 %v981_v2, %s1098_s29  ;;  %331 = vrot.lane.b32.xlu1 %v979_v1, %s1099_s30 }
  0x67   : > { %333 = vrot.lane.b32.xlu0 %v982_v3, %s1099_s30  ;;  %329 = vrot.lane.b32.xlu1 %v981_v2, %s1099_s30 }
  0x6b   : > { %548 = vrot.lane.b32.xlu0 %v1276_v5, %s1092_s7  ;;  %550 = vrot.lane.b32.xlu1 %v1279_v6, %s1092_s7 }
  0x6f   : > { %546 = vrot.lane.b32.xlu0 %v1284_v7, %s1092_s7  ;;  %559 = vrot.lane.b32.xlu1 %v1276_v5, %s1093_s25 }
  0x73   : > { %561 = vrot.lane.b32.xlu0 %v1279_v6, %s1093_s25  ;;  %557 = vrot.lane.b32.xlu1 %v1284_v7, %s1093_s25 }
  0x77   : > { %570 = vrot.lane.b32.xlu0 %v1276_v5, %s1094_s8  ;;  %572 = vrot.lane.b32.xlu1 %v1279_v6, %s1094_s8 }
  0x7b   : > { %568 = vrot.lane.b32.xlu0 %v1284_v7, %s1094_s8  ;;  %581 = vrot.lane.b32.xlu1 %v1276_v5, %s1095_s10 }
  0x7f   : > { %583 = vrot.lane.b32.xlu0 %v1279_v6, %s1095_s10  ;;  %579 = vrot.lane.b32.xlu1 %v1284_v7, %s1095_s10  ;;  %s1404_s10 = scalar_lea.vmem [#allocation5], %s915_s13  ;;  %s1100_s13 = smov 19  }
  0x80   : > { %481 = vst.msk [vmem:[%s1404_s10 + $0xc] sm:$0xf] %vm479_vm9, %v1091_v0  ;;  %480 = vst.msk [vmem:[%s1404_s10] sm:$0xf] %vm479_vm9, %v1091_v0 }
  0x81   : > { %888 = vst.msk [vmem:[%s1404_s10 + $0x18] sm:$0xf] %vm479_vm9, %v1091_v0  ;;  %889 = vst.msk [vmem:[%s1404_s10 + $0x24] sm:$0xf] %vm479_vm9, %v1091_v0 }
  0x83   : > { %592 = vrot.lane.b32.xlu0 %v1276_v5, %s1096_s11  ;;  %594 = vrot.lane.b32.xlu1 %v1279_v6, %s1096_s11 }
  0x87   : > { %590 = vrot.lane.b32.xlu0 %v1284_v7, %s1096_s11  ;;  %603 = vrot.lane.b32.xlu1 %v1276_v5, %s1097_s22  ;;  %s916_s11 = smul.u32 768, %s1150_s19 }
  0x89   : > { %s1462_s28 = scalar_lea.hbm %s1520_s4, %s916_s11 }
  0x8b   : > { %605 = vrot.lane.b32.xlu0 %v1279_v6, %s1097_s22  ;;  %601 = vrot.lane.b32.xlu1 %v1284_v7, %s1097_s22  ;;  %s788_s22 = sshll.u32 %s1404_s10, 4  ;;  %s1464_s22 = int_to_ptr.vmem [resolvable:$true] %s788_s22 }
  0x8c   : > { %p1027_p8 = scmp.lt.s32.totalorder %s1464_s22, %s1025_s6 }
  0x8f   : > { %614 = vrot.lane.b32.xlu0 %v1276_v5, %s1098_s29  ;;  %616 = vrot.lane.b32.xlu1 %v1279_v6, %s1098_s29 }
  0x93   : > { %612 = vrot.lane.b32.xlu0 %v1284_v7, %s1098_s29  ;;  %625 = vrot.lane.b32.xlu1 %v1276_v5, %s1099_s30  ;;  %s774_s29 = scalar_lea.sflag [#allocation4], %s1226_s12 }
  0x97   : > { %627 = vrot.lane.b32.xlu0 %v1279_v6, %s1099_s30  ;;  %623 = vrot.lane.b32.xlu1 %v1284_v7, %s1099_s30  ;;  %s1020_s30 = scalar_lea.vmem %s1464_s22, 768 }
  0x98   : > { %p1021_p6 = scmp.ne.s32.totalorder %s1464_s22, %s1020_s30  ;;  %p1028_p9 = scmp.lt.s32.totalorder %s1026_s9, %s1020_s30 }
  0x9a   : > { %p1022_p11 = pnand %p1021_p6, %p1528_p10  ;;  %p1029_p13 = por %p1028_p9, %p1027_p8 }
  0x9b   : > { %343 = vperm.xlu0 %977, %v222_v8   ;;  %348 = vperm.xlu1 %978, %v223_v9  }
  0x9c   : > { %p1023_p12 = pneg %p1022_p11 }
  0x9e   : > { %p1030_p1 = pnand %p1029_p13, %p1023_p12 }
  0xad   : > { %v248_v10 = vpop.permute.xlu0 %247  ;;  %v246_v11 = vpop.permute.xlu1 %245 }
  0xae   : > { %v252_v15 = vsel %vm251_vm1, %v246_v11, %v248_v10 }
  0xb1   : > { %v250_v12 = vpop.permute.xlu0 %249  ;;  %v260_v13 = vpop.permute.xlu1 %259 }
  0xb2   : > { %410 = vmatpush1.bf16.msra.mxu1 %v250_v12  ;;  %v253_v14 = vsel %vm251_vm1, %v248_v10, %v250_v12 }
  0xb3   : > { %366 = vmatprep.subr.bf16.mxu0 %v253_v14  ;;  %411 = vmatprep.subr.bf16.mxu1 %v1091_v0 }
  0xb4   : > { %367 = vmatpush1.bf16.msra.mxu0 %v252_v15 }
  0xb5   : > { %v262_v16 = vpop.permute.xlu0 %261  ;;  %v258_v17 = vpop.permute.xlu1 %257 }
  0xb6   : > { %412 = vmatpush1.bf16.msra.mxu1 %v262_v16  ;;  %v265_v18 = vsel %vm263_vm2, %v260_v13, %v262_v16  ;;  %v264_v19 = vsel %vm263_vm2, %v258_v17, %v260_v13 }
  0xb7   : > { %368 = vmatprep.subr.bf16.mxu0 %v265_v18  ;;  %413 = vmatprep.subr.bf16.mxu1 %v1091_v0 }
  0xb8   : > { %369 = vmatpush1.bf16.msra.mxu0 %v264_v19 }
  0xb9   : > { %v272_v20 = vpop.permute.xlu0 %271  ;;  %v274_v21 = vpop.permute.xlu1 %273 }
  0xba   : > { %v277_v22 = vsel %vm275_vm3, %v272_v20, %v274_v21  ;;  %414 = vmatpush1.bf16.msra.mxu1 %v274_v21 }
  0xbb   : > { %370 = vmatprep.subr.bf16.mxu0 %v277_v22  ;;  %415 = vmatprep.subr.bf16.mxu1 %v1091_v0 }
  0xbd   : > { %v270_v23 = vpop.permute.xlu0 %269  ;;  %v284_v24 = vpop.permute.xlu1 %283 }
  0xbe   : > { %v276_v25 = vsel %vm275_vm3, %v270_v23, %v272_v20 }
  0xbf   : > { %371 = vmatpush1.bf16.msra.mxu0 %v276_v25 }
  0xc1   : > { %v286_v26 = vpop.permute.xlu0 %285  ;;  %v282_v27 = vpop.permute.xlu1 %281 }
  0xc2   : > { %416 = vmatpush1.bf16.msra.mxu1 %v286_v26  ;;  %v289_v28 = vsel %vm287_vm4, %v284_v24, %v286_v26  ;;  %v288_v29 = vsel %vm287_vm4, %v282_v27, %v284_v24 }
  0xc3   : > { %372 = vmatprep.subr.bf16.mxu0 %v289_v28  ;;  %417 = vmatprep.subr.bf16.mxu1 %v1091_v0  ;;  %v455_v28 = vlaneseq }
  0xc4   : > { %373 = vmatpush1.bf16.msra.mxu0 %v288_v29 }
  0xc5   : > { %v296_v30 = vpop.permute.xlu0 %295  ;;  %v298_v31 = vpop.permute.xlu1 %297  ;;  %v456_v29 = vshrl.u32 %v455_v28, 7 }
  0xc6   : > { %v301_v32 = vsel %vm299_vm5, %v296_v30, %v298_v31  ;;  %418 = vmatpush1.bf16.msra.mxu1 %v298_v31 }
  0xc7   : > { %374 = vmatprep.subr.bf16.mxu0 %v301_v32  ;;  %419 = vmatprep.subr.bf16.mxu1 %v1091_v0  ;;  %v224_v32 = vld [vmem:[%s1519_s3] sm:$0x7] }
  0xc9   : > { %v294_v33 = vpop.permute.xlu0 %293  ;;  %v308_v34 = vpop.permute.xlu1 %307 }
  0xca   : > { %v300_v35 = vsel %vm299_vm5, %v294_v33, %v296_v30  ;;  %v465_v30 = vsub.s32 2, %v456_v29  ;;  %v457_v33 = vsub.s32 0, %v456_v29 }
  0xcb   : > { %375 = vmatpush1.bf16.msra.mxu0 %v300_v35 }
  0xcd   : > { %v310_v36 = vpop.permute.xlu0 %309  ;;  %v306_v37 = vpop.permute.xlu1 %305 }
  0xce   : > { %420 = vmatpush1.bf16.msra.mxu1 %v310_v36  ;;  %v313_v38 = vsel %vm311_vm6, %v308_v34, %v310_v36  ;;  %v312_v39 = vsel %vm311_vm6, %v306_v37, %v308_v34  ;;  %v461_v36 = vsub.s32 1, %v456_v29 }
  0xcf   : > { %376 = vmatprep.subr.bf16.mxu0 %v313_v38  ;;  %421 = vmatprep.subr.bf16.mxu1 %v1091_v0  ;;  %v466_v38 = vrot.slane %v224_v32, %v465_v30 }
  0xd0   : > { %377 = vmatpush1.bf16.msra.mxu0 %v312_v39 }
  0xd1   : > { %v320_v40 = vpop.permute.xlu0 %319  ;;  %v322_v41 = vpop.permute.xlu1 %321 }
  0xd2   : > { %v325_v42 = vsel %vm323_vm7, %v320_v40, %v322_v41  ;;  %422 = vmatpush1.bf16.msra.mxu1 %v322_v41 }
  0xd3   : > { %378 = vmatprep.subr.bf16.mxu0 %v325_v42  ;;  %423 = vmatprep.subr.bf16.mxu1 %v1091_v0 }
  0xd5   : > { %v318_v43 = vpop.permute.xlu0 %317  ;;  %v332_v44 = vpop.permute.xlu1 %331 }
  0xd6   : > { %v324_v45 = vsel %vm323_vm7, %v318_v43, %v320_v40 }
  0xd7   : > { %379 = vmatpush1.bf16.msra.mxu0 %v324_v45 }
  0xd9   : > { %v334_v46 = vpop.permute.xlu0 %333  ;;  %v330_v48 = vpop.permute.xlu1 %329 }
  0xda   : > { %424 = vmatpush1.bf16.msra.mxu1 %v334_v46  ;;  %v337_v49 = vsel %vm335_vm8, %v332_v44, %v334_v46  ;;  %v336_v50 = vsel %vm335_vm8, %v330_v48, %v332_v44  ;;  %v458_v44 = vrot.slane %v224_v32, %v457_v33 }
  0xdb   : > { %380 = vmatprep.subr.bf16.mxu0 %v337_v49  ;;  %677 = vmatprep.subr.bf16.mxu1 %v1091_v0  ;;  %v462_v49 = vrot.slane %v224_v32, %v461_v36 }
  0xdc   : > { %381 = vmatpush1.bf16.msra.mxu0 %v336_v50 }
  0xdd   : > { %v549_v51 = vpop.permute.xlu0 %548  ;;  %440 = vmatmul.mubr.bf16.vlgmr.msra.gmra.mrb[0].mxu1 %v1359_v47  ;;  %634 = vmatprep.subr.bf16.mxu0 %v1276_v5  ;;  %v551_v52 = vpop.permute.xlu1 %550 }
  0xde   : > { %678 = vmatpush1.bf16.msra.mxu1 %v1279_v6  ;;  %887 = vmatprep.mubr.msk.bf16.mxu1 %vm360_vm0, %v1266_v4  ;;  %v553_v53 = vsel %vm251_vm1, %v549_v51, %v551_v52 }
  0xdf   : > { %397 = vmatmul.mubr.bf16.vlgmr.msra.gmra.mrb[0].mxu0 %v1359_v47  ;;  %679 = vmatprep.subr.bf16.mxu1 %v1091_v0 }
  0xe0   : > { %635 = vmatpush1.bf16.msra.mxu0 %v1284_v7  ;;  %886 = vmatprep.mubr.msk.bf16.mxu0 %vm360_vm0, %v1266_v4 }
  0xe1   : > { %v547_v54 = vpop.permute.xlu0 %546  ;;  %636 = vmatprep.subr.bf16.mxu0 %v553_v53  ;;  %v560_v56 = vpop.permute.xlu1 %559 }
  0xe2   : > { %v552_v55 = vsel %vm251_vm1, %v547_v54, %v549_v51  ;;  %680 = vmatpush1.bf16.msra.mxu1 %v551_v52 }
  0xe3   : > { %681 = vmatprep.subr.bf16.mxu1 %v1091_v0 }
  0xe4   : > { %637 = vmatpush1.bf16.msra.mxu0 %v552_v55 }
  0xe5   : > { %v562_v57 = vpop.permute.xlu0 %561  ;;  %v558_v58 = vpop.permute.xlu1 %557 }
  0xe6   : > { %682 = vmatpush1.bf16.msra.mxu1 %v562_v57  ;;  %v564_v59 = vsel %vm263_vm2, %v560_v56, %v562_v57  ;;  %v563_v60 = vsel %vm263_vm2, %v558_v58, %v560_v56 }
  0xe7   : > { %638 = vmatprep.subr.bf16.mxu0 %v564_v59  ;;  %683 = vmatprep.subr.bf16.mxu1 %v1091_v0 }
  0xe8   : > { %639 = vmatpush1.bf16.msra.mxu0 %v563_v60 }
  0xe9   : > { %v571_v61 = vpop.permute.xlu0 %570  ;;  %v573_v62 = vpop.permute.xlu1 %572 }
  0xea   : > { %v575_v63 = vsel %vm275_vm3, %v571_v61, %v573_v62  ;;  %684 = vmatpush1.bf16.msra.mxu1 %v573_v62 }
  0xeb   : > { %640 = vmatprep.subr.bf16.mxu0 %v575_v63  ;;  %685 = vmatprep.subr.bf16.mxu1 %v1091_v0 }
  0xed   : > { %v569_v1 = vpop.permute.xlu0 %568  ;;  %v582_v3 = vpop.permute.xlu1 %581 }
  0xee   : > { %v574_v2 = vsel %vm275_vm3, %v569_v1, %v571_v61 }
  0xef   : > { %641 = vmatpush1.bf16.msra.mxu0 %v574_v2 }
  0xf1   : > { %v584_v4 = vpop.permute.xlu0 %583  ;;  %v580_v5 = vpop.permute.xlu1 %579 }
  0xf2   : > { %686 = vmatpush1.bf16.msra.mxu1 %v584_v4  ;;  %v586_v6 = vsel %vm287_vm4, %v582_v3, %v584_v4  ;;  %v585_v7 = vsel %vm287_vm4, %v580_v5, %v582_v3 }
  0xf3   : > { %642 = vmatprep.subr.bf16.mxu0 %v586_v6  ;;  %687 = vmatprep.subr.bf16.mxu1 %v1091_v0 }
  0xf4   : > { %643 = vmatpush1.bf16.msra.mxu0 %v585_v7 }
  0xf5   : > { %v593_v8 = vpop.permute.xlu0 %592  ;;  %v595_v9 = vpop.permute.xlu1 %594 }
  0xf6   : > { %v597_v10 = vsel %vm299_vm5, %v593_v8, %v595_v9  ;;  %688 = vmatpush1.bf16.msra.mxu1 %v595_v9 }
  0xf7   : > { %644 = vmatprep.subr.bf16.mxu0 %v597_v10  ;;  %689 = vmatprep.subr.bf16.mxu1 %v1091_v0 }
  0xf9   : > { %v591_v11 = vpop.permute.xlu0 %590  ;;  %v604_v13 = vpop.permute.xlu1 %603 }
  0xfa   : > { %v596_v12 = vsel %vm299_vm5, %v591_v11, %v593_v8 }
  0xfb   : > { %645 = vmatpush1.bf16.msra.mxu0 %v596_v12 }
  0xfd   : > { %v606_v14 = vpop.permute.xlu0 %605  ;;  %v602_v15 = vpop.permute.xlu1 %601 }
  0xfe   : > { %690 = vmatpush1.bf16.msra.mxu1 %v606_v14  ;;  %v608_v16 = vsel %vm311_vm6, %v604_v13, %v606_v14  ;;  %v607_v17 = vsel %vm311_vm6, %v602_v15, %v604_v13 }
  0xff   : > { %646 = vmatprep.subr.bf16.mxu0 %v608_v16  ;;  %691 = vmatprep.subr.bf16.mxu1 %v1091_v0 }
 0x100   : > { %647 = vmatpush1.bf16.msra.mxu0 %v607_v17 }
 0x101   : > { %v615_v18 = vpop.permute.xlu0 %614  ;;  %v617_v19 = vpop.permute.xlu1 %616 }
 0x102   : > { %v619_v20 = vsel %vm323_vm7, %v615_v18, %v617_v19  ;;  %692 = vmatpush1.bf16.msra.mxu1 %v617_v19 }
 0x103   : > { %648 = vmatprep.subr.bf16.mxu0 %v619_v20  ;;  %693 = vmatprep.subr.bf16.mxu1 %v1091_v0 }
 0x105   : > { %v613_v21 = vpop.permute.xlu0 %612  ;;  %v626_v23 = vpop.permute.xlu1 %625 }
 0x106   : > { %v618_v22 = vsel %vm323_vm7, %v613_v21, %v615_v18 }
 0x107   : > { %649 = vmatpush1.bf16.msra.mxu0 %v618_v22 }
 0x109   : > { %v628_v24 = vpop.permute.xlu0 %627  ;;  %v624_v25 = vpop.permute.xlu1 %623 }
 0x10a   : > { %694 = vmatpush1.bf16.msra.mxu1 %v628_v24  ;;  %v630_v26 = vsel %vm335_vm8, %v626_v23, %v628_v24  ;;  %v629_v27 = vsel %vm335_vm8, %v624_v25, %v626_v23 }
 0x10b   : > { %650 = vmatprep.subr.bf16.mxu0 %v630_v26 }
 0x10c   : > { %651 = vmatpush1.bf16.msra.mxu0 %v629_v27 }
 0x10d   : > { %710 = vmatmul.mubr.bf16.vlgmr.msra.gmra.mrb[4].mxu1 %v1359_v47 }
 0x10f   : > { %667 = vmatmul.mubr.bf16.vlgmr.msra.gmra.mrb[4].mxu0 %v1359_v47 }
 0x11a   : > { %v344_v31 = vpop.permute.xlu0 %343  ;;  %v349_v35 = vpop.permute.xlu1 %348 }
 0x1b0   : > { %v441_v34 = vpop.f32.mrb[0].mxu1 }
 0x1b1   : > { %v443_v37 = vpop.f32.mrb[1].mxu1  ;;  %v442_v39 = vadd.f32 %v441_v34, %v344_v31 }
 0x1b2   : > { %v444_v40 = vpop.f32.mrb[2].mxu1  ;;  %v398_v41 = vpop.f32.mrb[0].mxu0 }
 0x1b3   : > { %v445_v42 = vadd.f32 %v444_v40, %v349_v35  ;;  %v399_v43 = vadd.f32 %v398_v41, %v344_v31  ;;  %v400_v45 = vpop.f32.mrb[1].mxu0  ;;  %v450_v46 = vmax.f32 %v442_v39, 0.0  ;;  %v446_v47 = vpop.f32.mrb[3].mxu1 }
 0x1b4   : > { %v401_v48 = vadd.f32 %v400_v45, %v344_v31  ;;  %v402_v50 = vpop.f32.mrb[2].mxu0 }
 0x1b5   : > { %v453_v51 = vmax.f32 %v445_v42, 0.0  ;;  %v448_v52 = vmax.f32 %v399_v43, 0.0  ;;  %v403_v53 = vadd.f32 %v402_v50, %v349_v35  ;;  %v404_v54 = vpop.f32.mrb[3].mxu0  ;;  %v472_v55 = vmul.f32 %v466_v38, %v450_v46 }
 0x1b6   : > { %v449_v56 = vmax.f32 %v401_v48, 0.0  ;;  %v405_v57 = vadd.f32 %v404_v54, %v349_v35 }
 0x1b7   : > { %v475_v58 = vmul.f32 %v466_v38, %v453_v51  ;;  %v470_v59 = vmul.f32 %v458_v44, %v448_v52  ;;  %v451_v60 = vmax.f32 %v403_v53, 0.0  ;;  %v906_v61 = vpack.c.bf16 %v472_v55, %v472_v55 }
 0x1b8   : > { %v471_v62 = vmul.f32 %v462_v49, %v449_v56  ;;  %v452_v63 = vmax.f32 %v405_v57, 0.0 }
 0x1b9   : > { %v908_v1 = vpack.c.bf16 %v475_v58, %v475_v58  ;;  %v473_v2 = vmul.f32 %v458_v44, %v451_v60  ;;  %497 = vrot.lane.b32.xlu1 %v906_v61, %s1100_s13 }
 0x1ba   : > { %v474_v3 = vmul.f32 %v462_v49, %v452_v63  ;;  %v905_v4 = vpack.c.bf16 %v471_v62, %v470_v59 }
 0x1bb   : > { %501 = vrot.lane.b32.xlu0 %v908_v1, %s1100_s13 }
 0x1bc   : > { %v907_v5 = vpack.c.bf16 %v474_v3, %v473_v2 }
 0x1bd   : > { %495 = vrot.lane.b32.xlu1 %v905_v4, %s1100_s13 }
 0x1bf   : > { %499 = vrot.lane.b32.xlu0 %v907_v5, %s1100_s13 }
 0x1e0   : > { %v711_v6 = vpop.f32.mrb[4].mxu1 }
 0x1e1   : > { %v713_v7 = vpop.f32.mrb[5].mxu1  ;;  %v712_v8 = vadd.f32 %v711_v6, %v344_v31 }
 0x1e2   : > { %v668_v9 = vpop.f32.mrb[4].mxu0  ;;  %v714_v10 = vpop.f32.mrb[6].mxu1 }
 0x1e3   : > { %v669_v11 = vadd.f32 %v668_v9, %v344_v31  ;;  %v670_v12 = vpop.f32.mrb[5].mxu0  ;;  %v716_v13 = vpop.f32.mrb[7].mxu1  ;;  %v715_v14 = vadd.f32 %v714_v10, %v349_v35  ;;  %v720_v20 = vmax.f32 %v712_v8, 0.0 }
 0x1e4   : > { %v671_v15 = vadd.f32 %v670_v12, %v344_v31  ;;  %v672_v16 = vpop.f32.mrb[6].mxu0 }
 0x1e5   : > { %v718_v17 = vmax.f32 %v669_v11, 0.0  ;;  %v673_v18 = vadd.f32 %v672_v16, %v349_v35  ;;  %v674_v19 = vpop.f32.mrb[7].mxu0  ;;  %v723_v25 = vmax.f32 %v715_v14, 0.0  ;;  %v726_v29 = vmul.f32 %v720_v20, %v466_v38 }
 0x1e6   : > { %v719_v21 = vmax.f32 %v671_v15, 0.0  ;;  %v675_v22 = vadd.f32 %v674_v19, %v349_v35 }
 0x1e7   : > { %v724_v23 = vmul.f32 %v718_v17, %v458_v44  ;;  %v721_v24 = vmax.f32 %v673_v18, 0.0  ;;  %v729_v33 = vmul.f32 %v723_v25, %v466_v38  ;;  %v910_v34 = vpack.c.bf16 %v726_v29, %v726_v29 }
 0x1e8   : > { %v725_v26 = vmul.f32 %v719_v21, %v462_v49  ;;  %v722_v27 = vmax.f32 %v675_v22, 0.0 }
 0x1e9   : > { %v727_v28 = vmul.f32 %v721_v24, %v458_v44  ;;  %v912_v36 = vpack.c.bf16 %v729_v33, %v729_v33 }
 0x1ea   : > { %v728_v30 = vmul.f32 %v722_v27, %v462_v49  ;;  %v909_v32 = vpack.c.bf16 %v725_v26, %v724_v23 }
 0x1ec   : > { %749 = vrot.lane.b32.xlu1 %v909_v32, %s1100_s13  ;;  %v911_v31 = vpack.c.bf16 %v728_v30, %v727_v28 }
 0x1ee   : > { %753 = vrot.lane.b32.xlu0 %v911_v31, %s1100_s13 }
 0x1f0   : > { %751 = vrot.lane.b32.xlu1 %v910_v34, %s1100_s13 }
 0x1f2   : > { %755 = vrot.lane.b32.xlu0 %v912_v36, %s1100_s13 }
 0x22b   : > { %v498_v35 = vpop.permute.xlu1 %497 }
 0x22d   : > { %v502_v37 = vpop.permute.xlu0 %501 }
 0x22f   : > { %v496_v38 = vpop.permute.xlu1 %495 }
 0x230   : > { %v503_v40 = vrot.slane %v496_v38, 4 }
 0x231   : > { %v500_v41 = vpop.permute.xlu0 %499 }
 0x232   : > { %v504_v42 = vrot.slane %v500_v41, 4  ;;  %v506_v43 = vsel %vm505_vm12, %v503_v40, %v496_v38  ;;  %v507_v44 = vsel %vm505_vm12, %v503_v40, %v498_v35 }
 0x233   : > { %517 = vst.msk [vmem:[%s1404_s10] sm:$0xff] %vm1422_vm13, %v506_v43 }
 0x234   : > { %519 = vst.msk [vmem:[%s1404_s10 + $0x8] sm:$0xf] %vm518_vm14, %v507_v44  ;;  %v508_v45 = vsel %vm505_vm12, %v504_v42, %v500_v41  ;;  %v509_v46 = vsel %vm505_vm12, %v504_v42, %v502_v37 }
 0x235   : > { %523 = vst.msk [vmem:[%s1404_s10 + $0x8] sm:$0xf] %vm522_vm15, %v1091_v0 }
 0x236   : > { %520 = vst.msk [vmem:[%s1404_s10 + $0xc] sm:$0xff] %vm1422_vm13, %v508_v45 }
 0x237   : > { %521 = vst.msk [vmem:[%s1404_s10 + $0x14] sm:$0xf] %vm518_vm14, %v509_v46 }
 0x238   : > { %524 = vst.msk [vmem:[%s1404_s10 + $0x14] sm:$0xf] %vm522_vm15, %v1091_v0 }
 0x25e   : > { %v750_v47 = vpop.permute.xlu1 %749 }
 0x25f   : > { %v757_v48 = vrot.slane %v750_v47, 4 }
 0x260   : > { %v754_v49 = vpop.permute.xlu0 %753 }
 0x261   : > { %v759_v50 = vsel %vm505_vm12, %v757_v48, %v750_v47  ;;  %v758_v51 = vrot.slane %v754_v49, 4 }
 0x262   : > { %894 = vst.msk [vmem:[%s1404_s10 + $0x18] sm:$0xff] %vm1422_vm13, %v759_v50  ;;  %v752_v52 = vpop.permute.xlu1 %751 }
 0x263   : > { %v761_v53 = vsel %vm505_vm12, %v758_v51, %v754_v49  ;;  %v760_v54 = vsel %vm505_vm12, %v757_v48, %v752_v52 }
 0x264   : > { %896 = vst.msk [vmem:[%s1404_s10 + $0x24] sm:$0xff] %vm1422_vm13, %v761_v53  ;;  %v756_v55 = vpop.permute.xlu0 %755 }
 0x265   : > { %895 = vst.msk [vmem:[%s1404_s10 + $0x20] sm:$0xf] %vm518_vm14, %v760_v54  ;;  %v762_v56 = vsel %vm505_vm12, %v758_v51, %v756_v55 }
 0x266   : > { %898 = vst.msk [vmem:[%s1404_s10 + $0x20] sm:$0xf] %vm522_vm15, %v1091_v0 }
 0x267   : > { %897 = vst.msk [vmem:[%s1404_s10 + $0x2c] sm:$0xf] %vm518_vm14, %v762_v56 }
 0x268   : > { %899 = vst.msk [vmem:[%s1404_s10 + $0x2c] sm:$0xf] %vm522_vm15, %v1091_v0 }
 0x269   : > { %1033 = shalt.err (!%p1030_p1)
}
 0x26a   : > { %s1034_s14 = scalar_lea.hbm %s1462_s28, 768  ;;  %s1038_s25 = scalar_lea.hbm %s1520_s4, 3072 }
 0x26b   : > { %p1035_p3 = scmp.ne.s32.totalorder %s1462_s28, %s1034_s14  ;;  %p1039_p0 = scmp.lt.u32.totalorder %s1462_s28, %s1520_s4 }
 0x26c   : > { %p1040_p2 = scmp.lt.u32.totalorder %s1038_s25, %s1034_s14  ;;  %p1042_p6 = scmp.lt.u32.totalorder %s1034_s14, %s1462_s28 }
 0x26d   : > { %p1036_p4 = pnand %p1035_p3, %p1528_p10 }
 0x26e   : > { %p1041_p7 = por %p1040_p2, %p1039_p0 }
 0x26f   : > { %p1037_p5 = pneg %p1036_p4 }
 0x270   : > { %p1043_p11 = por %p1042_p6, %p1041_p7 }
 0x272   : > { %p1044_p12 = pnand %p1043_p11, %p1037_p5 }
 0x274   : > { %1047 = shalt.err (!%p1044_p12)
}
 0x275   : > { %s1102_s13 = smov 192   ;;  %s1103_s11 = smov 12  }
 0x276   : > { %919 = dma.vmem_to_hbm [thread:$0]  (%p1528_p10), %s1464_s22, 768, %s1462_s28, %s774_s29, %s1102_s13, %s1102_s13, %s1103_s11  }
 0x277 PF: > { %p930_p8 = scmp.ge.s32.totalorder %s1086_s18, 2  ;;  %s803_s19 = sand.u32 1, %s1074_s15  }
 0x278   : > { %p1529_p9 = scmp.ne.s32.totalorder %s1524_s27, 0  ;;  %s804_s23 = scalar_lea.sflag [#allocation4], %s803_s19 }
 0x27a   : > { %p926_p13 = pnand %p930_p8, %p1529_p9 }
 0x27c   : > { %1069 = dma.done.wait (!%p926_p13), %s804_s23, 768  }
 0x27d   : > { %1071 = vsyncadd (!%p926_p13), %s804_s23, 4294966528  ;;  %p17_p1 = scmp.ge.s32.totalorder %s1154_s21, 6   ;;  %s1530_s15 = smov %s1078_s16 }
 0x27e   : > { %s1531_s16 = smov %s1082_s17  ;;  %s1532_s17 = smov %s1166_s24 }
 0x27f   : > { %s1533_s18 = smov %s1154_s21  ;;  %19 = sbr.rel (!%p17_p1) target bundleno = 5 (0x5), region = 83 }
 0x286   :  { %809 = vsyncpa [#allocation3], 1 }
 0x287   :  { %811 = vsyncpa [#allocation3 + $0x1], 1 }
 0x288   :  { %812 = vsyncpa [#allocation4], 1 }
 0x289   :  { %814 = vsyncpa [#allocation4 + $0x1], 1 }

</bundles_post_ra>
